<compile_context>
chip_gen: v7x
topology: tpu7x:2x2x1
jax: 0.10.0
libtpu: 0.0.40
codegen_flags: <defaults>
</compile_context>

<pallas_src>
import functools

import jax
import jax.numpy as jnp
from jax.experimental import pallas as pl
from jax.experimental.pallas import tpu as pltpu


def _round_up(n: int, m: int) -> int:
    return ((n + m - 1) // m) * m


def _mlp_kernel(x_ref, w1_ref, b1_ref, w2_ref, b2_ref, w3_ref, b3_ref, o_ref):
    # lin1 + relu: bf16 operands, f32 MXU accumulate, f32 elementwise.
    h = jnp.dot(x_ref[...], w1_ref[...], preferred_element_type=jnp.float32)
    h = jnp.maximum(h + b1_ref[...], 0.0)
    # lin2 + relu: cast the f32 activation to the weight dtype only for the matmul.
    h = jnp.dot(h.astype(w2_ref.dtype), w2_ref[...],
                preferred_element_type=jnp.float32)
    h = jnp.maximum(h + b2_ref[...], 0.0)
    # lin3 (no activation); output block is lane-padded to a multiple of 128.
    out = jnp.dot(h.astype(w3_ref.dtype), w3_ref[...],
                  preferred_element_type=jnp.float32)
    o_ref[...] = (out + b3_ref[...]).astype(o_ref.dtype)


@functools.partial(jax.jit, static_argnames=("block_b",))
def single_flow_translate(x, w1, b1, w2, b2, w3, b3, *, block_b: int = 256):
    """Fused MLP forward: lin1 -> relu -> lin2 -> relu -> lin3.

    x: (B, latent_dim); w1: (latent_dim, fc); w2: (fc, fc); w3: (fc, latent_dim)
    b*: (1, out_features)
    """
    B, latent_dim = x.shape
    fc = w1.shape[1]
    out_dim = w3.shape[1]
    out_dtype = x.dtype
    operand_dtype = jnp.bfloat16

    # Batch tile: up to block_b rows per grid step, always a multiple of 8.
    TB = min(_round_up(block_b, 8), _round_up(B, 8))
    Bp = _round_up(B, TB)
    # Lane-dense output: pad the final output width up to a multiple of 128.
    Np = _round_up(out_dim, 128)

    xp = x if Bp == B else jnp.pad(x, ((0, Bp - B), (0, 0)))
    w3p = w3 if Np == out_dim else jnp.pad(w3, ((0, 0), (0, Np - out_dim)))
    b3p = b3 if Np == out_dim else jnp.pad(b3, ((0, 0), (0, Np - out_dim)))

    # Matmul operands in bf16 (MXU rate, half the DMA); biases stay f32.
    xp = xp.astype(operand_dtype)
    w1c = w1.astype(operand_dtype)
    w2c = w2.astype(operand_dtype)
    w3c = w3p.astype(operand_dtype)
    b1c = b1.astype(jnp.float32)
    b2c = b2.astype(jnp.float32)
    b3c = b3p.astype(jnp.float32)

    grid = (Bp // TB,)

    op_bytes = jnp.dtype(operand_dtype).itemsize
    cost = pl.CostEstimate(
        flops=2 * Bp * (latent_dim * fc + fc * fc + fc * Np),
        transcendentals=0,
        bytes_accessed=(Bp * latent_dim * op_bytes
                        + (latent_dim * fc + fc * fc + fc * Np) * op_bytes
                        + (fc + fc + Np) * 4
                        + Bp * Np * jnp.dtype(out_dtype).itemsize),
    )

    out = pl.pallas_call(
        _mlp_kernel,
        out_shape=jax.ShapeDtypeStruct((Bp, Np), out_dtype),
        grid=grid,
        in_specs=[
            pl.BlockSpec((TB, latent_dim), lambda i: (i, 0)),   # x: per-step tile
            pl.BlockSpec((latent_dim, fc), lambda i: (0, 0)),   # W1: VMEM-resident
            pl.BlockSpec((1, fc), lambda i: (0, 0)),            # b1
            pl.BlockSpec((fc, fc), lambda i: (0, 0)),           # W2
            pl.BlockSpec((1, fc), lambda i: (0, 0)),            # b2
            pl.BlockSpec((fc, Np), lambda i: (0, 0)),           # W3 (lane-padded)
            pl.BlockSpec((1, Np), lambda i: (0, 0)),            # b3 (lane-padded)
        ],
        out_specs=pl.BlockSpec((TB, Np), lambda i: (i, 0)),
        compiler_params=pltpu.CompilerParams(
            dimension_semantics=("parallel",)),
        cost_estimate=cost,
    )(xp, w1c, b1c, w2c, b2c, w3c, b3c)

    return out[:B, :out_dim]


def _reference(x, w1, b1, w2, b2, w3, b3, operand_dtype=jnp.float32):
    f32 = jnp.float32
    c = lambda a: a.astype(operand_dtype).astype(f32)
    h = jnp.maximum(jnp.dot(c(x), c(w1)) + b1, 0.0)
    h = jnp.maximum(jnp.dot(c(h), c(w2)) + b2, 0.0)
    return jnp.dot(c(h), c(w3)) + b3


if __name__ == "__main__":
    # Small shapes implied by the module: latent_dim=32, fc_size=64, batch=8.
    B, latent_dim, fc_size = 8, 32, 64
    key = jax.random.PRNGKey(0)
    kx, k1, k2, k3, kb1, kb2, kb3, kx2 = jax.random.split(key, 8)

    def init_w(k, fan_in, fan_out):
        bound = 1.0 / jnp.sqrt(fan_in)
        return jax.random.uniform(k, (fan_in, fan_out), jnp.float32, -bound, bound)

    def init_b(k, fan_in, fan_out):
        bound = 1.0 / jnp.sqrt(fan_in)
        return jax.random.uniform(k, (1, fan_out), jnp.float32, -bound, bound)

    w1 = init_w(k1, latent_dim, fc_size)
    b1 = init_b(kb1, latent_dim, fc_size)
    w2 = init_w(k2, fc_size, fc_size)
    b2 = init_b(kb2, fc_size, fc_size)
    w3 = init_w(k3, fc_size, latent_dim)
    b3 = init_b(kb3, fc_size, latent_dim)

    # --- Test 1: module-sized batch (single grid step). ---
    x = jax.random.normal(kx, (B, latent_dim), dtype=jnp.float32)
    out = jax.block_until_ready(single_flow_translate(x, w1, b1, w2, b2, w3, b3))
    assert out.shape == (B, latent_dim)
    ref_bf16 = _reference(x, w1, b1, w2, b2, w3, b3, operand_dtype=jnp.bfloat16)
    ref_f32 = _reference(x, w1, b1, w2, b2, w3, b3, operand_dtype=jnp.float32)
    assert jnp.allclose(out, ref_bf16, atol=1e-3, rtol=1e-3)
    assert jnp.allclose(out, ref_f32, atol=1e-1, rtol=1e-1)

    # --- Test 2: exercise the batch grid + row padding path (3 grid steps). ---
    B2 = 40
    x2 = jax.random.normal(kx2, (B2, latent_dim), dtype=jnp.float32)
    out2 = jax.block_until_ready(
        single_flow_translate(x2, w1, b1, w2, b2, w3, b3, block_b=16))
    assert out2.shape == (B2, latent_dim)
    ref2 = _reference(x2, w1, b1, w2, b2, w3, b3, operand_dtype=jnp.bfloat16)
    assert jnp.allclose(out2, ref2, atol=1e-3, rtol=1e-3)

    print("KERNEL_OK")
</pallas_src>

<mosaic_0001>
module attributes {stable_mosaic.version = 11 : i64} {
  func.func @_mlp_kernel(%arg0: i32, %arg1: memref<8x32xbf16, #tpu.memory_space<vmem>>, %arg2: memref<32x64xbf16, #tpu.memory_space<vmem>>, %arg3: memref<1x64xf32, #tpu.memory_space<vmem>>, %arg4: memref<64x64xbf16, #tpu.memory_space<vmem>>, %arg5: memref<1x64xf32, #tpu.memory_space<vmem>>, %arg6: memref<64x128xbf16, #tpu.memory_space<vmem>>, %arg7: memref<1x128xf32, #tpu.memory_space<vmem>>, %arg8: memref<8x128xf32, #tpu.memory_space<vmem>>) attributes {dimension_semantics = [#tpu.dimension_semantics<parallel>], iteration_bounds = array<i64: 1>, scalar_prefetch = 0 : i64, scratch_operands = 0 : i64, tpu.core_type = #tpu.core_type<tc>, window_params = [{transform_indices = @transform_0, window_bounds = array<i64: 8, 32>}, {pipeline_mode = #tpu.pipeline_mode<synchronous>, transform_indices = @transform_1, window_bounds = array<i64: 32, 64>}, {pipeline_mode = #tpu.pipeline_mode<synchronous>, transform_indices = @transform_2, window_bounds = array<i64: 1, 64>}, {pipeline_mode = #tpu.pipeline_mode<synchronous>, transform_indices = @transform_3, window_bounds = array<i64: 64, 64>}, {pipeline_mode = #tpu.pipeline_mode<synchronous>, transform_indices = @transform_4, window_bounds = array<i64: 1, 64>}, {pipeline_mode = #tpu.pipeline_mode<synchronous>, transform_indices = @transform_5, window_bounds = array<i64: 64, 128>}, {pipeline_mode = #tpu.pipeline_mode<synchronous>, transform_indices = @transform_6, window_bounds = array<i64: 1, 128>}, {transform_indices = @transform_7, window_bounds = array<i64: 8, 128>}]} {
    %c0 = arith.constant 0 : index
    %c0_0 = arith.constant 0 : index
    %0 = vector.load %arg1[%c0, %c0_0] : memref<8x32xbf16, #tpu.memory_space<vmem>>, vector<8x32xbf16>
    %c0_1 = arith.constant 0 : index
    %c0_2 = arith.constant 0 : index
    %1 = vector.load %arg2[%c0_1, %c0_2] : memref<32x64xbf16, #tpu.memory_space<vmem>>, vector<32x64xbf16>
    %cst = arith.constant dense<0.000000e+00> : vector<8x64xf32>
    %2 = tpu.matmul %0, %1, %cst {dimension_numbers = #tpu.dot_dimension_numbers<[1], [0], [0], [1], [0, 0, 1, 1], [], []>} : vector<8x32xbf16>, vector<32x64xbf16>, vector<8x64xf32> -> vector<8x64xf32>
    %c0_3 = arith.constant 0 : index
    %c0_4 = arith.constant 0 : index
    %3 = vector.load %arg3[%c0_3, %c0_4] : memref<1x64xf32, #tpu.memory_space<vmem>>, vector<1x64xf32>
    %4 = vector.broadcast %3 : vector<1x64xf32> to vector<8x64xf32>
    %5 = arith.addf %2, %4 : vector<8x64xf32>
    %cst_5 = arith.constant 0.000000e+00 : f32
    %6 = vector.broadcast %cst_5 : f32 to vector<8x64xf32>
    %7 = arith.maximumf %5, %6 : vector<8x64xf32>
    %8 = arith.truncf %7 : vector<8x64xf32> to vector<8x64xbf16>
    %c0_6 = arith.constant 0 : index
    %c0_7 = arith.constant 0 : index
    %9 = vector.load %arg4[%c0_6, %c0_7] : memref<64x64xbf16, #tpu.memory_space<vmem>>, vector<64x64xbf16>
    %cst_8 = arith.constant dense<0.000000e+00> : vector<8x64xf32>
    %10 = tpu.matmul %8, %9, %cst_8 {dimension_numbers = #tpu.dot_dimension_numbers<[1], [0], [0], [1], [0, 0, 1, 1], [], []>} : vector<8x64xbf16>, vector<64x64xbf16>, vector<8x64xf32> -> vector<8x64xf32>
    %c0_9 = arith.constant 0 : index
    %c0_10 = arith.constant 0 : index
    %11 = vector.load %arg5[%c0_9, %c0_10] : memref<1x64xf32, #tpu.memory_space<vmem>>, vector<1x64xf32>
    %12 = vector.broadcast %11 : vector<1x64xf32> to vector<8x64xf32>
    %13 = arith.addf %10, %12 : vector<8x64xf32>
    %cst_11 = arith.constant 0.000000e+00 : f32
    %14 = vector.broadcast %cst_11 : f32 to vector<8x64xf32>
    %15 = arith.maximumf %13, %14 : vector<8x64xf32>
    %16 = arith.truncf %15 : vector<8x64xf32> to vector<8x64xbf16>
    %c0_12 = arith.constant 0 : index
    %c0_13 = arith.constant 0 : index
    %17 = vector.load %arg6[%c0_12, %c0_13] : memref<64x128xbf16, #tpu.memory_space<vmem>>, vector<64x128xbf16>
    %cst_14 = arith.constant dense<0.000000e+00> : vector<8x128xf32>
    %18 = tpu.matmul %16, %17, %cst_14 {dimension_numbers = #tpu.dot_dimension_numbers<[1], [0], [0], [1], [0, 0, 1, 1], [], []>} : vector<8x64xbf16>, vector<64x128xbf16>, vector<8x128xf32> -> vector<8x128xf32>
    %c0_15 = arith.constant 0 : index
    %c0_16 = arith.constant 0 : index
    %19 = vector.load %arg7[%c0_15, %c0_16] : memref<1x128xf32, #tpu.memory_space<vmem>>, vector<1x128xf32>
    %20 = vector.broadcast %19 : vector<1x128xf32> to vector<8x128xf32>
    %21 = arith.addf %18, %20 : vector<8x128xf32>
    %c0_17 = arith.constant 0 : index
    %c0_18 = arith.constant 0 : index
    %22 = vector.load %arg8[%c0_17, %c0_18] : memref<8x128xf32, #tpu.memory_space<vmem>>, vector<8x128xf32>
    tpu.vector_store %arg8[%c0_17, %c0_18], %21 {strides = array<i32>} : memref<8x128xf32, #tpu.memory_space<vmem>>, vector<8x128xf32>,
    return
  }
  func.func @transform_0(%arg0: i32) -> (i32, i32) {
    %c0_i32 = arith.constant 0 : i32
    %c0_i32_0 = arith.constant 0 : i32
    return %arg0, %c0_i32 : i32, i32
  }
  func.func @transform_1(%arg0: i32) -> (i32, i32) {
    %c0_i32 = arith.constant 0 : i32
    %c0_i32_0 = arith.constant 0 : i32
    %c0_i32_1 = arith.constant 0 : i32
    return %c0_i32, %c0_i32_0 : i32, i32
  }
  func.func @transform_2(%arg0: i32) -> (i32, i32) {
    %c0_i32 = arith.constant 0 : i32
    %c0_i32_0 = arith.constant 0 : i32
    %c0_i32_1 = arith.constant 0 : i32
    return %c0_i32, %c0_i32_0 : i32, i32
  }
  func.func @transform_3(%arg0: i32) -> (i32, i32) {
    %c0_i32 = arith.constant 0 : i32
    %c0_i32_0 = arith.constant 0 : i32
    %c0_i32_1 = arith.constant 0 : i32
    return %c0_i32, %c0_i32_0 : i32, i32
  }
  func.func @transform_4(%arg0: i32) -> (i32, i32) {
    %c0_i32 = arith.constant 0 : i32
    %c0_i32_0 = arith.constant 0 : i32
    %c0_i32_1 = arith.constant 0 : i32
    return %c0_i32, %c0_i32_0 : i32, i32
  }
  func.func @transform_5(%arg0: i32) -> (i32, i32) {
    %c0_i32 = arith.constant 0 : i32
    %c0_i32_0 = arith.constant 0 : i32
    %c0_i32_1 = arith.constant 0 : i32
    return %c0_i32, %c0_i32_0 : i32, i32
  }
  func.func @transform_6(%arg0: i32) -> (i32, i32) {
    %c0_i32 = arith.constant 0 : i32
    %c0_i32_0 = arith.constant 0 : i32
    %c0_i32_1 = arith.constant 0 : i32
    return %c0_i32, %c0_i32_0 : i32, i32
  }
  func.func @transform_7(%arg0: i32) -> (i32, i32) {
    %c0_i32 = arith.constant 0 : i32
    %c0_i32_0 = arith.constant 0 : i32
    return %arg0, %c0_i32 : i32, i32
  }
}

</mosaic_0001>

<bundles_post_ra>
// kernel: single_flow_translate.1
= control target key start
LH: loop header
LB: loop body
LE: loop exit
PB: predicated region body
PF: predicated region fallthrough
CT: control target
= control target key end

     0   :  { %v378_v1 = vmov 0.0   ;;  %vm379_vm0 = vmmov 0   ;;  %vm52_vm1 = vcmask 261120   ;;  %s480_s0 = inlined_call_operand.vmem [shape: bf16[8,32], index: 0, kind: input, shape index: {}]   ;;  %s481_s1 = inlined_call_operand.vmem [shape: bf16[32,64], index: 1, kind: input, shape index: {}]   ;;  %s482_s2 = inlined_call_operand.vmem [shape: f32[1,64], index: 2, kind: input, shape index: {}]   ;;  %s483_s3 = inlined_call_operand.vmem [shape: bf16[64,64], index: 3, kind: input, shape index: {}]   ;;  %s484_s4 = inlined_call_operand.vmem [shape: f32[1,64], index: 4, kind: input, shape index: {}]   ;;  %s485_s5 = inlined_call_operand.vmem [shape: bf16[64,128], index: 5, kind: input, shape index: {}]   ;;  %s486_s6 = inlined_call_operand.vmem [shape: f32[1,128], index: 6, kind: input, shape index: {}]   ;;  %s487_s7 = inlined_call_operand.hbm [shape: f32[8,128], index: 7, kind: output, shape index: {}]  }
   0x1   :  { %v344_v0 = vld [vmem:[%s481_s1] sm:$0xff]   ;;  %309 = vmatprep.subr.bf16.mxu0 %v378_v1  ;;  %317 = vmatprep.subr.bf16.mxu1 %v378_v1  ;;  %v345_v2 = vld [vmem:[%s481_s1 + $0x8] sm:$0xff]  }
   0x2   :  { %310 = vmatpush3.bf16.msra.mxu0 %v344_v0  ;;  %313 = vmatprep.mubr.msk.bf16.mxu0 %vm379_vm0, %v378_v1  ;;  %v346_v3 = vld [vmem:[%s483_s3] sm:$0xff]   ;;  %v347_v5 = vld [vmem:[%s483_s3 + $0x8] sm:$0xff]  }
   0x3   :  { %311 = vmatprep.subr.bf16.mxu0 %v378_v1  ;;  %325 = vmatprep.mubr.msk.bf16.mxu1 %vm379_vm0, %v378_v1  ;;  %v28_v4 = vld [vmem:[%s480_s0] sm:$0xf] }
   0x4   :  { %318 = vmatpush3.bf16.msra.mxu1 %v346_v3 }
   0x5   :  { %319 = vmatprep.subr.bf16.mxu1 %v378_v1 }
   0x6   :  { %312 = vmatpush3.bf16.msra.mxu0 %v345_v2 }
   0x7   :  { %329 = vmatprep.subr.bf16.mxu0 %v378_v1 }
   0x8   :  { %320 = vmatpush3.bf16.msra.mxu1 %v347_v5 }
   0x9   :  { %12 = vsyncpa [#allocation3], 0  ;;  %314 = vmatmul.mubr.msk.bf16.vlgmr.msra.gmra.mrb[0].mxu0 %vm52_vm1, %v28_v4  ;;  %321 = vmatprep.subr.bf16.mxu1 %v378_v1  ;;  %v348_v6 = vld [vmem:[%s483_s3 + $0x10] sm:$0xff]   ;;  %v349_v7 = vld [vmem:[%s483_s3 + $0x18] sm:$0xff]   ;;  %vm137_vm2 = vcmask 523264   ;;  %s380_s25 = smov [#allocation2]  }
   0xa   :  { %337 = vmatprep.mubr.msk.bf16.mxu0 %vm379_vm0, %v378_v1  ;;  %v350_v8 = vld [vmem:[%s485_s5] sm:$0xff]   ;;  %v351_v9 = vld [vmem:[%s485_s5 + $0x8] sm:$0xff]   ;;  %v352_v18 = vld [vmem:[%s485_s5 + $0x10] sm:$0xff]  }
   0xb   :  { %330 = vmatpush3.bf16.msra.mxu0 %v350_v8  ;;  %v280_v10 = vld [vmem:[%s482_s2] ss:$0 sm:$0xff]  ;;  %v353_v19 = vld [vmem:[%s485_s5 + $0x18] sm:$0xff]   ;;  %s272_s5 = sshll.u32 %s380_s25, 4  ;;  %s273_s5 = int_to_ptr.vmem [resolvable:$true] %s272_s5 }
   0xc   :  { %322 = vmatpush3.bf16.msra.mxu1 %v348_v6  ;;  %331 = vmatprep.subr.bf16.mxu0 %v378_v1  ;;  %v284_v20 = vld [vmem:[%s484_s4] ss:$0 sm:$0xff]  ;;  %s354_s4 = scalar_lea.vmem %s273_s5, 128  ;;  %p359_p1 = scmp.lt.s32.totalorder %s273_s5, %s273_s5 }
   0xd   :  { %323 = vmatprep.subr.bf16.mxu1 %v378_v1  ;;  %v290_v28 = vld [vmem:[%s486_s6] ss:$0 sm:$0xff]  ;;  %p355_p0 = scmp.ne.s32.totalorder %s273_s5, %s354_s4  ;;  %p360_p2 = scmp.lt.s32.totalorder %s354_s4, %s354_s4 }
   0xf   :  { %332 = vmatpush3.bf16.msra.mxu0 %v351_v9  ;;  %p361_p3 = por %p360_p2, %p359_p1 }
  0x10   :  { %324 = vmatpush3.bf16.msra.mxu1 %v349_v7  ;;  %333 = vmatprep.subr.bf16.mxu0 %v378_v1 }
  0x11   :  { %p362_p4 = pnand %p361_p3, %p355_p0 }
  0x13   :  { %334 = vmatpush3.bf16.msra.mxu0 %v352_v18 }
  0x14   :  { %335 = vmatprep.subr.bf16.mxu0 %v378_v1 }
  0x17   :  { %336 = vmatpush3.bf16.msra.mxu0 %v353_v19 }
  0xdc   :  { %v90_v11 = vpop.f32.mrb[0].mxu0 }
  0xdd   :  { %v91_v12 = vadd.f32 %v280_v10, %v90_v11  ;;  %v315_v13 = vpop.f32.mrb[1].mxu0 }
  0xde   :  { %v93_v14 = vpop.f32.mrb[2].mxu0 }
  0xdf   :  { %v96_v15 = vmax.f32 %v91_v12, 0.0  ;;  %v316_v16 = vpop.f32.mrb[3].mxu0 }
  0xe1   :  { %v97_v17 = vpack.c.bf16 %v96_v15, %v96_v15 }
  0xe3   :  { %326 = vmatmul.mubr.msk.bf16.vlgmr.msra.gmra.mrb[0].mxu1 %vm137_vm2, %v97_v17 }
 0x1b6   :  { %v175_v21 = vpop.f32.mrb[0].mxu1 }
 0x1b7   :  { %v176_v22 = vadd.f32 %v284_v20, %v175_v21  ;;  %v327_v23 = vpop.f32.mrb[1].mxu1 }
 0x1b8   :  { %v178_v24 = vpop.f32.mrb[2].mxu1 }
 0x1b9   :  { %v181_v25 = vmax.f32 %v176_v22, 0.0  ;;  %v328_v26 = vpop.f32.mrb[3].mxu1 }
 0x1bb   :  { %v182_v27 = vpack.c.bf16 %v181_v25, %v181_v25 }
 0x1bd   :  { %338 = vmatmul.mubr.msk.bf16.vlgmr.msra.gmra.mrb[4].mxu0 %vm137_vm2, %v182_v27 }
 0x290   :  { %v259_v29 = vpop.f32.mrb[4].mxu0 }
 0x291   :  { %v260_v30 = vadd.f32 %v290_v28, %v259_v29  ;;  %v339_v31 = vpop.f32.mrb[5].mxu0 }
 0x292   :  { %v262_v32 = vpop.f32.mrb[6].mxu0 }
 0x293   :  { %265 = vst [vmem:[#allocation2] sm:$0xff] %v260_v30  ;;  %v340_v33 = vpop.f32.mrb[7].mxu0 }
 0x294   :  { %365 = shalt.err (!%p362_p4)
}
 0x295   :  { %s366_s6 = scalar_lea.hbm %s487_s7, 128 }
 0x296   :  { %p367_p5 = scmp.ne.s32.totalorder %s487_s7, %s366_s6  ;;  %p370_p6 = scmp.lt.u32.totalorder %s366_s6, %s487_s7 }
 0x298   :  { %p372_p7 = pnand %p370_p6, %p367_p5 }
 0x29a   :  { %375 = shalt.err (!%p372_p7)
}
 0x29b   :  { %275 = dma.vmem_to_hbm [thread:$0]  %s273_s5, 128, %s487_s7, [#allocation3]  }
 0x29c   :  { %376 = dma.done.wait [#allocation3], 128  }
 0x29d   :  { %377 = vsyncadd [#allocation3], 4294967168 }
 0x29e   :  { %279 = vsyncpa [#allocation3], 1 }

</bundles_post_ra>
